<compile_context>
chip_gen: v7x
topology: tpu7x:2x2x1
jax: 0.10.0
libtpu: 0.0.40
codegen_flags: <defaults>
</compile_context>

<pallas_src>
import functools
import math

import jax
import jax.numpy as jnp
from jax.experimental import pallas as pl
from jax.experimental.pallas import tpu as pltpu

_SQRT_HALF = 1.0 / math.sqrt(2.0)


def _erf_f32(x):
    # Abramowitz & Stegun 7.1.26, |err| <= 1.5e-7. Built only from exp/mul/add/where so it
    # lowers cleanly in Mosaic (exp goes to the EUP slot, which is idle here).
    # TODO(synk): switch to jax.lax.erf if/when an erf_p lowering is guaranteed in Mosaic.
    a1, a2, a3, a4, a5 = (0.254829592, -0.284496736, 1.421413741,
                          -1.453152027, 1.061405429)
    p = 0.3275911
    ax = jnp.abs(x)
    t = 1.0 / (1.0 + p * ax)
    poly = ((((a5 * t + a4) * t + a3) * t + a2) * t + a1) * t
    y = 1.0 - poly * jnp.exp(-ax * ax)
    return jnp.where(x < 0.0, -y, y)


def _gelu_f32(x):
    return x * 0.5 * (1.0 + _erf_f32(x * _SQRT_HALF))


def _bias_gelu_layernorm(h, b_ref, g_ref, be_ref, o_ref, eps):
    """Fused epilogue: bias add -> erf-GELU -> TF-style LayerNorm -> store."""
    h = h + b_ref[...].astype(jnp.float32)
    h = _gelu_f32(h)
    # TF-style LayerNorm over the last dim (biased variance, eps inside rsqrt).
    u = jnp.mean(h, axis=-1, keepdims=True)
    d = h - u
    s = jnp.mean(d * d, axis=-1, keepdims=True)
    y = d * jax.lax.rsqrt(s + eps)
    g = g_ref[...].astype(jnp.float32)
    b = be_ref[...].astype(jnp.float32)
    o_ref[...] = (g * y + b).astype(o_ref.dtype)


def _input_dense_kernel_single(x_ref, w_ref, b_ref, g_ref, be_ref, o_ref, *, eps):
    # Whole K in one MXU pass; no scratch accumulator, no reduction grid axis.
    h = jnp.dot(x_ref[...], w_ref[...], preferred_element_type=jnp.float32)
    _bias_gelu_layernorm(h, b_ref, g_ref, be_ref, o_ref, eps)


def _input_dense_kernel_ktiled(x_ref, w_ref, b_ref, g_ref, be_ref, o_ref, acc_ref, *, eps):
    k = pl.program_id(1)
    last = pl.num_programs(1) - 1

    # MXU matmul of this K tile, accumulated in f32. First step writes the accumulator
    # directly (no zero-init pass); last step consumes acc + partial without writing acc back.
    partial = jnp.dot(x_ref[...], w_ref[...], preferred_element_type=jnp.float32)

    @pl.when(k == 0)
    def _init():
        acc_ref[...] = partial

    @pl.when(jnp.logical_and(k > 0, k < last))
    def _accum():
        acc_ref[...] += partial

    @pl.when(k == last)
    def _finalize():
        _bias_gelu_layernorm(acc_ref[...] + partial, b_ref, g_ref, be_ref, o_ref, eps)


def _sublane(dtype):
    return {4: 8, 2: 16, 1: 32}.get(jnp.dtype(dtype).itemsize, 8)


def _pick_tk(K):
    # K tile must be a multiple of 128 (x's last dim / W's sublane dim) or the full extent.
    if K <= 1024:
        return K
    for cand in (512, 384, 256, 128):
        if K % cand == 0:
            return cand
    return K  # ragged K: keep it whole so undefined padding never enters the matmul.


def _pick_block_rows(rows, tk, H, dtype, budget_bytes=12 * 1024 * 1024):
    """Largest sublane-aligned row tile s.t. double-buffered x/out tiles, the W tile and the
    f32 accumulator stay within ~12 MiB (fits v5e's 16 MiB scoped VMEM; well under the 32 MiB
    scoped default on v6e/v7x and v7x's 64 MiB physical)."""
    item = jnp.dtype(dtype).itemsize
    sub = _sublane(dtype)
    fixed = 2 * tk * H * item + 6 * H * item            # W tile (dbl-buffered) + b/gamma/beta
    per_row = 2 * tk * item + 2 * H * item + 4 * H      # x + out (dbl-buffered) + f32 acc
    avail = max(budget_bytes - fixed, per_row * sub)
    br = max(sub, (avail // per_row) // sub * sub)
    rows_padded = -(-rows // sub) * sub
    br = min(br, rows_padded)
    # Keep >= 2 row-grid steps when possible so v7x can shard the row axis across its 2 TCs.
    if br >= rows and rows > sub:
        br = max(sub, (-(-(rows // 2) // sub)) * sub)
        br = min(br, rows_padded)
    return br


def input_dense_forward(x, weight, bias, gamma, beta, eps=1e-12, block_rows=None):
    """x: [..., in_size]; weight: [hidden, in_size] (PyTorch Linear layout);
    bias/gamma/beta: [hidden]. Returns [..., hidden] with x's dtype."""
    orig_shape = x.shape
    K = int(orig_shape[-1])
    H = int(weight.shape[0])
    assert int(weight.shape[1]) == K

    rows = 1
    for d in orig_shape[:-1]:
        rows *= int(d)

    x2 = x.reshape(rows, K)
    w2 = jnp.transpose(weight)          # [K, H], one-time layout fix outside the hot loop
    b2 = bias.reshape(1, H)
    g2 = gamma.reshape(1, H)
    be2 = beta.reshape(1, H)

    tk = _pick_tk(K)
    sub = _sublane(x.dtype)
    if block_rows is None:
        block_rows = _pick_block_rows(rows, tk, H, x.dtype)
    else:
        block_rows = max(sub, (block_rows // sub) * sub)   # guard: sublane-aligned

    row_steps = pl.cdiv(rows, block_rows)
    k_steps = pl.cdiv(K, tk)

    # TODO(synk): for production shapes with H < 128, repack to a lane-dense output layout
    # (out lanes are only H/128 utilized here; fine for the small demo shapes below).
    if k_steps == 1:
        # Single-pass kernel: no accumulator scratch, no reduction grid axis.
        out = pl.pallas_call(
            functools.partial(_input_dense_kernel_single, eps=eps),
            out_shape=jax.ShapeDtypeStruct((rows, H), x.dtype),
            grid_spec=pltpu.PrefetchScalarGridSpec(
                num_scalar_prefetch=0,
                grid=(row_steps,),
                in_specs=[
                    pl.BlockSpec((block_rows, K), lambda i: (i, 0)),   # x
                    pl.BlockSpec((K, H), lambda i: (0, 0)),            # W^T (resident)
                    pl.BlockSpec((1, H), lambda i: (0, 0)),            # bias
                    pl.BlockSpec((1, H), lambda i: (0, 0)),            # gamma
                    pl.BlockSpec((1, H), lambda i: (0, 0)),            # beta
                ],
                out_specs=pl.BlockSpec((block_rows, H), lambda i: (i, 0)),
            ),
            compiler_params=pltpu.CompilerParams(
                dimension_semantics=("parallel",),
            ),
        )(x2, w2, b2, g2, be2)
    else:
        out = pl.pallas_call(
            functools.partial(_input_dense_kernel_ktiled, eps=eps),
            out_shape=jax.ShapeDtypeStruct((rows, H), x.dtype),
            grid_spec=pltpu.PrefetchScalarGridSpec(
                num_scalar_prefetch=0,
                grid=(row_steps, k_steps),                             # reduction (K) axis last
                in_specs=[
                    pl.BlockSpec((block_rows, tk), lambda i, k: (i, k)),   # x
                    pl.BlockSpec((tk, H), lambda i, k: (k, 0)),            # W^T
                    pl.BlockSpec((1, H), lambda i, k: (0, 0)),             # bias
                    pl.BlockSpec((1, H), lambda i, k: (0, 0)),             # gamma
                    pl.BlockSpec((1, H), lambda i, k: (0, 0)),             # beta
                ],
                out_specs=pl.BlockSpec((block_rows, H), lambda i, k: (i, 0)),
                scratch_shapes=[pltpu.VMEM((block_rows, H), jnp.float32)],
            ),
            compiler_params=pltpu.CompilerParams(
                dimension_semantics=("parallel", "arbitrary"),
            ),
        )(x2, w2, b2, g2, be2)
    return out.reshape(orig_shape[:-1] + (H,))


def _reference(x, weight, bias, gamma, beta, eps):
    # Pure-JAX reference matching the PyTorch InputDense forward (exact erf-based GELU).
    h = jnp.einsum("...k,hk->...h", x, weight,
                   preferred_element_type=jnp.float32) + bias
    h = h * 0.5 * (1.0 + jax.scipy.special.erf(h / math.sqrt(2.0)))
    u = jnp.mean(h, axis=-1, keepdims=True)
    s = jnp.mean((h - u) ** 2, axis=-1, keepdims=True)
    return gamma * ((h - u) / jnp.sqrt(s + eps)) + beta


def _check(batch, seq, in_size, hidden, eps, key):
    kx, kw, kb = jax.random.split(key, 3)
    x = jax.random.normal(kx, (batch, seq, in_size), dtype=jnp.float32)
    weight = jax.random.normal(kw, (hidden, in_size), dtype=jnp.float32) / math.sqrt(in_size)
    bias = 0.1 * jax.random.normal(kb, (hidden,), dtype=jnp.float32)
    gamma = jnp.ones((hidden,), dtype=jnp.float32)   # matches nn.Parameter(torch.ones(H))
    beta = jnp.zeros((hidden,), dtype=jnp.float32)   # matches nn.Parameter(torch.zeros(H))

    y = input_dense_forward(x, weight, bias, gamma, beta, eps=eps)
    jax.block_until_ready(y)

    ref = _reference(x, weight, bias, gamma, beta, eps)
    assert y.shape == ref.shape
    err = float(jnp.max(jnp.abs(y - ref)))
    assert jnp.allclose(y, ref, atol=2e-4, rtol=2e-4), err


if __name__ == "__main__":
    eps = 1e-12
    key = jax.random.PRNGKey(0)
    k1, k2 = jax.random.split(key)

    # Small shape consistent with the module (exercises the single-K-pass kernel).
    _check(batch=2, seq=8, in_size=16, hidden=32, eps=eps, key=k1)

    # Larger in_size to exercise the K-tiled reduction path (4 K steps of 512).
    _check(batch=2, seq=8, in_size=2048, hidden=128, eps=eps, key=k2)

    print("KERNEL_OK")
</pallas_src>

<mosaic_0001>
module attributes {stable_mosaic.version = 11 : i64} {
  func.func @_input_dense_kernel_single(%arg0: i32, %arg1: memref<8x16xf32, #tpu.memory_space<vmem>>, %arg2: memref<16x32xf32, #tpu.memory_space<vmem>>, %arg3: memref<1x32xf32, #tpu.memory_space<vmem>>, %arg4: memref<1x32xf32, #tpu.memory_space<vmem>>, %arg5: memref<1x32xf32, #tpu.memory_space<vmem>>, %arg6: memref<8x32xf32, #tpu.memory_space<vmem>>) attributes {dimension_semantics = [#tpu.dimension_semantics<parallel>], iteration_bounds = array<i64: 2>, scalar_prefetch = 0 : i64, scratch_operands = 0 : i64, tpu.core_type = #tpu.core_type<tc>, window_params = [{transform_indices = @transform_0, window_bounds = array<i64: 8, 16>}, {pipeline_mode = #tpu.pipeline_mode<synchronous>, transform_indices = @transform_1, window_bounds = array<i64: 16, 32>}, {pipeline_mode = #tpu.pipeline_mode<synchronous>, transform_indices = @transform_2, window_bounds = array<i64: 1, 32>}, {pipeline_mode = #tpu.pipeline_mode<synchronous>, transform_indices = @transform_3, window_bounds = array<i64: 1, 32>}, {pipeline_mode = #tpu.pipeline_mode<synchronous>, transform_indices = @transform_4, window_bounds = array<i64: 1, 32>}, {transform_indices = @transform_5, window_bounds = array<i64: 8, 32>}]} {
    %c0 = arith.constant 0 : index
    %c0_0 = arith.constant 0 : index
    %0 = vector.load %arg1[%c0, %c0_0] : memref<8x16xf32, #tpu.memory_space<vmem>>, vector<8x16xf32>
    %c0_1 = arith.constant 0 : index
    %c0_2 = arith.constant 0 : index
    %1 = vector.load %arg2[%c0_1, %c0_2] : memref<16x32xf32, #tpu.memory_space<vmem>>, vector<16x32xf32>
    %cst = arith.constant dense<0.000000e+00> : vector<8x32xf32>
    %2 = tpu.matmul %0, %1, %cst {dimension_numbers = #tpu.dot_dimension_numbers<[1], [0], [0], [1], [0, 0, 1, 1], [], []>} : vector<8x16xf32>, vector<16x32xf32>, vector<8x32xf32> -> vector<8x32xf32>
    %c0_3 = arith.constant 0 : index
    %c0_4 = arith.constant 0 : index
    %3 = vector.load %arg3[%c0_3, %c0_4] : memref<1x32xf32, #tpu.memory_space<vmem>>, vector<1x32xf32>
    %4 = vector.broadcast %3 : vector<1x32xf32> to vector<8x32xf32>
    %5 = arith.addf %2, %4 : vector<8x32xf32>
    %cst_5 = arith.constant 5.000000e-01 : f32
    %6 = vector.broadcast %cst_5 : f32 to vector<8x32xf32>
    %7 = arith.mulf %5, %6 : vector<8x32xf32>
    %cst_6 = arith.constant 0.707106769 : f32
    %8 = vector.broadcast %cst_6 : f32 to vector<8x32xf32>
    %9 = arith.mulf %5, %8 : vector<8x32xf32>
    %10 = math.absf %9 : vector<8x32xf32>
    %cst_7 = arith.constant 0.327591091 : f32
    %11 = vector.broadcast %cst_7 : f32 to vector<8x32xf32>
    %12 = arith.mulf %11, %10 : vector<8x32xf32>
    %cst_8 = arith.constant 1.000000e+00 : f32
    %13 = vector.broadcast %cst_8 : f32 to vector<8x32xf32>
    %14 = arith.addf %13, %12 : vector<8x32xf32>
    %cst_9 = arith.constant 1.000000e+00 : f32
    %15 = vector.broadcast %cst_9 : f32 to vector<8x32xf32>
    %16 = arith.divf %15, %14 : vector<8x32xf32>
    %cst_10 = arith.constant 1.06140542 : f32
    %17 = vector.broadcast %cst_10 : f32 to vector<8x32xf32>
    %18 = arith.mulf %17, %16 : vector<8x32xf32>
    %cst_11 = arith.constant -1.45315206 : f32
    %19 = vector.broadcast %cst_11 : f32 to vector<8x32xf32>
    %20 = arith.addf %18, %19 : vector<8x32xf32>
    %21 = arith.mulf %20, %16 : vector<8x32xf32>
    %cst_12 = arith.constant 1.42141378 : f32
    %22 = vector.broadcast %cst_12 : f32 to vector<8x32xf32>
    %23 = arith.addf %21, %22 : vector<8x32xf32>
    %24 = arith.mulf %23, %16 : vector<8x32xf32>
    %cst_13 = arith.constant -0.284496725 : f32
    %25 = vector.broadcast %cst_13 : f32 to vector<8x32xf32>
    %26 = arith.addf %24, %25 : vector<8x32xf32>
    %27 = arith.mulf %26, %16 : vector<8x32xf32>
    %cst_14 = arith.constant 0.254829586 : f32
    %28 = vector.broadcast %cst_14 : f32 to vector<8x32xf32>
    %29 = arith.addf %27, %28 : vector<8x32xf32>
    %30 = arith.mulf %29, %16 : vector<8x32xf32>
    %cst_15 = arith.constant 0.000000e+00 : f32
    %31 = vector.broadcast %cst_15 : f32 to vector<8x32xf32>
    %32 = arith.subf %31, %10 : vector<8x32xf32>
    %33 = arith.mulf %32, %10 : vector<8x32xf32>
    %34 = math.exp %33 : vector<8x32xf32>
    %35 = arith.mulf %30, %34 : vector<8x32xf32>
    %cst_16 = arith.constant 1.000000e+00 : f32
    %36 = vector.broadcast %cst_16 : f32 to vector<8x32xf32>
    %37 = arith.subf %36, %35 : vector<8x32xf32>
    %cst_17 = arith.constant 0.000000e+00 : f32
    %38 = vector.broadcast %cst_17 : f32 to vector<8x32xf32>
    %39 = arith.cmpf olt, %9, %38 : vector<8x32xf32>
    %cst_18 = arith.constant 0.000000e+00 : f32
    %40 = vector.broadcast %cst_18 : f32 to vector<8x32xf32>
    %41 = arith.subf %40, %37 : vector<8x32xf32>
    %42 = arith.select %39, %41, %37 : vector<8x32xi1>, vector<8x32xf32>
    %cst_19 = arith.constant 1.000000e+00 : f32
    %43 = vector.broadcast %cst_19 : f32 to vector<8x32xf32>
    %44 = arith.addf %43, %42 : vector<8x32xf32>
    %45 = arith.mulf %7, %44 : vector<8x32xf32>
    %cst_20 = arith.constant dense<0.000000e+00> : vector<8xf32>
    %46 = vector.multi_reduction <add>, %45, %cst_20 [1] : vector<8x32xf32> to vector<8xf32>
    %47 = vector.shape_cast %46 : vector<8xf32> to vector<8x1xf32>
    %cst_21 = arith.constant 3.200000e+01 : f32
    %48 = vector.broadcast %cst_21 : f32 to vector<8x1xf32>
    %49 = arith.divf %47, %48 : vector<8x1xf32>
    %50 = vector.broadcast %49 : vector<8x1xf32> to vector<8x32xf32>
    %51 = arith.subf %45, %50 : vector<8x32xf32>
    %52 = arith.mulf %51, %51 : vector<8x32xf32>
    %cst_22 = arith.constant dense<0.000000e+00> : vector<8xf32>
    %53 = vector.multi_reduction <add>, %52, %cst_22 [1] : vector<8x32xf32> to vector<8xf32>
    %54 = vector.shape_cast %53 : vector<8xf32> to vector<8x1xf32>
    %cst_23 = arith.constant 3.200000e+01 : f32
    %55 = vector.broadcast %cst_23 : f32 to vector<8x1xf32>
    %56 = arith.divf %54, %55 : vector<8x1xf32>
    %cst_24 = arith.constant 9.99999996E-13 : f32
    %57 = vector.broadcast %cst_24 : f32 to vector<8x1xf32>
    %58 = arith.addf %56, %57 : vector<8x1xf32>
    %59 = math.rsqrt %58 : vector<8x1xf32>
    %60 = vector.broadcast %59 : vector<8x1xf32> to vector<8x32xf32>
    %61 = arith.mulf %51, %60 : vector<8x32xf32>
    %c0_25 = arith.constant 0 : index
    %c0_26 = arith.constant 0 : index
    %62 = vector.load %arg4[%c0_25, %c0_26] : memref<1x32xf32, #tpu.memory_space<vmem>>, vector<1x32xf32>
    %c0_27 = arith.constant 0 : index
    %c0_28 = arith.constant 0 : index
    %63 = vector.load %arg5[%c0_27, %c0_28] : memref<1x32xf32, #tpu.memory_space<vmem>>, vector<1x32xf32>
    %64 = vector.broadcast %62 : vector<1x32xf32> to vector<8x32xf32>
    %65 = arith.mulf %64, %61 : vector<8x32xf32>
    %66 = vector.broadcast %63 : vector<1x32xf32> to vector<8x32xf32>
    %67 = arith.addf %65, %66 : vector<8x32xf32>
    %c0_29 = arith.constant 0 : index
    %c0_30 = arith.constant 0 : index
    %68 = vector.load %arg6[%c0_29, %c0_30] : memref<8x32xf32, #tpu.memory_space<vmem>>, vector<8x32xf32>
    tpu.vector_store %arg6[%c0_29, %c0_30], %67 {strides = array<i32>} : memref<8x32xf32, #tpu.memory_space<vmem>>, vector<8x32xf32>,
    return
  }
  func.func @transform_0(%arg0: i32) -> (i32, i32) {
    %c0_i32 = arith.constant 0 : i32
    %c0_i32_0 = arith.constant 0 : i32
    return %arg0, %c0_i32 : i32, i32
  }
  func.func @transform_1(%arg0: i32) -> (i32, i32) {
    %c0_i32 = arith.constant 0 : i32
    %c0_i32_0 = arith.constant 0 : i32
    %c0_i32_1 = arith.constant 0 : i32
    return %c0_i32, %c0_i32_0 : i32, i32
  }
  func.func @transform_2(%arg0: i32) -> (i32, i32) {
    %c0_i32 = arith.constant 0 : i32
    %c0_i32_0 = arith.constant 0 : i32
    %c0_i32_1 = arith.constant 0 : i32
    return %c0_i32, %c0_i32_0 : i32, i32
  }
  func.func @transform_3(%arg0: i32) -> (i32, i32) {
    %c0_i32 = arith.constant 0 : i32
    %c0_i32_0 = arith.constant 0 : i32
    %c0_i32_1 = arith.constant 0 : i32
    return %c0_i32, %c0_i32_0 : i32, i32
  }
  func.func @transform_4(%arg0: i32) -> (i32, i32) {
    %c0_i32 = arith.constant 0 : i32
    %c0_i32_0 = arith.constant 0 : i32
    %c0_i32_1 = arith.constant 0 : i32
    return %c0_i32, %c0_i32_0 : i32, i32
  }
  func.func @transform_5(%arg0: i32) -> (i32, i32) {
    %c0_i32 = arith.constant 0 : i32
    %c0_i32_0 = arith.constant 0 : i32
    return %arg0, %c0_i32 : i32, i32
  }
}

</mosaic_0001>

<bundles_post_ra>
// kernel: tpu_custom_call.1
= control target key start
LH: loop header
LB: loop body
LE: loop exit
PB: predicated region body
PF: predicated region fallthrough
CT: control target
= control target key end

     0   :  { %10 = vsyncpa [#allocation3], 0  ;;  %s971_s0 = inlined_call_operand.hbm [shape: f32[16,16], index: 0, kind: input, shape index: {}]   ;;  %s972_s1 = inlined_call_operand.hbm [shape: f32[16,32], index: 1, kind: input, shape index: {}]   ;;  %s973_s2 = inlined_call_operand.vmem [shape: f32[1,32], index: 2, kind: input, shape index: {}]   ;;  %s974_s3 = inlined_call_operand.vmem [shape: f32[1,32], index: 3, kind: input, shape index: {}]   ;;  %s975_s4 = inlined_call_operand.vmem [shape: f32[1,32], index: 4, kind: input, shape index: {}]   ;;  %s976_s5 = inlined_call_operand.hbm [shape: f32[16,32], index: 5, kind: output, shape index: {}]  }
   0x1   :  { %12 = vsyncpa [#allocation3 + $0x1], 0 }
   0x2   :  { %13 = vsyncpa [#allocation6], 0 }
   0x3   :  { %14 = vsyncpa [#allocation4], 0 }
   0x4   :  { %16 = vsyncpa [#allocation4 + $0x1], 0  ;;  %s759_s18 = smov 0   ;;  %s761_s19 = smov 0  }
   0x5   :  { %s763_s20 = smov 0   ;;  %s765_s21 = smov 0  }
   0x6 LB: > { %s780_s22 = sadd.s32 4294967295, %s719_s21   ;;  %s492_s23 = sadd.s32 4294967294, %s719_s21   ;;  %s719_s21 = sphi %s765_s21, %s996_s21   ;;  %s715_s20 = sphi %s763_s20, %s995_s20   ;;  %s711_s19 = sphi %s761_s19, %s994_s19   ;;  %s707_s18 = sphi %s759_s18, %s993_s18  }
   0x7   : > { %p42_p0 = scmp.ne.s32.totalorder %s711_s19, %s707_s18  ;;  %p977_p1 = scmp.eq.s32.totalorder %s780_s22, 0 }
   0x8   : > { %p156_p3 = scmp.eq.s32.totalorder %s492_s23, 1  ;;  %p493_p5 = scmp.ge.s32.totalorder %s719_s21, 1 }
   0x9   : > { %p789_p4 = por %p977_p1, %p42_p0  ;;  %p163_p7 = scmp.lt.s32.totalorder %s719_s21, 3 }
   0xa   : > { %p794_p6 = por %p156_p3, %p42_p0  ;;  %s721_s27 = smov [#allocation5]  }
   0xb   : > { %s980_s24 = scalar_select %p789_p4, 1, 0 }
   0xc   : > { %s981_s25 = scalar_select %p794_p6, 1, 0 }
   0xd   : > { %p799_p8 = pnand %p493_p5, %p163_p7  ;;  %s175_s28 = sshll.u32 %s721_s27, 4  ;;  %s803_s28 = int_to_ptr.vmem [resolvable:$true] %s175_s28 }
   0xe   : > { %s815_s30 = sadd.s32 1, %s719_s21   ;;  %s29_s6 = sadd.s32 1, %s715_s20 }
   0xf   : > { %s982_s26 = scalar_select %p799_p8, 1, 0 }
  0x10   : > { %p531_p9 = pneg %p799_p8  ;;  %s26_s7 = ssub.s32 %s719_s21, %s815_s30 }
  0x11   : > { %s591_s10 = scalar_lea.hbm %s972_s1, 256 }
  0x12   : > { %p810_p11 = pnand %p531_p9, %p977_p1  ;;  %p592_p12 = scmp.ne.s32.totalorder %s972_s1, %s591_s10 }
  0x13   : > { %p598_p5 = scmp.lt.u32.totalorder %s591_s10, %s972_s1 }
  0x14   : > { %p593_p13 = pneg %p810_p11 }
  0x16   : > { %p594_p0 = pnand %p593_p13, %p592_p12 }
  0x18   : > { %p595_p3 = pneg %p594_p0 }
  0x1a   : > { %p600_p7 = pnand %p598_p5, %p595_p3 }
  0x1c   : > { %603 = shalt.err (!%p600_p7)
}
  0x1d   : > { %s604_s15 = scalar_lea.vmem %s803_s28, 256  ;;  %p612_p2 = scmp.lt.s32.totalorder %s803_s28, %s803_s28 }
  0x1e   : > { %p605_p9 = scmp.ne.s32.totalorder %s803_s28, %s604_s15  ;;  %p613_p6 = scmp.lt.s32.totalorder %s604_s15, %s604_s15 }
  0x20   : > { %p607_p10 = pnand %p605_p9, %p593_p13  ;;  %p614_p4 = por %p613_p6, %p612_p2 }
  0x22   : > { %p608_p1 = pneg %p607_p10 }
  0x24   : > { %p615_p8 = pnand %p614_p4, %p608_p1 }
  0x26   : > { %618 = shalt.err (!%p615_p8)
}
  0x27   : > { %s722_s16 = smov 128   ;;  %s723_s17 = smov 8  }
  0x28   : > { %534 = dma.hbm_to_vmem [thread:$0]  (!%p810_p11), %s972_s1, 256, %s803_s28, [#allocation6], %s722_s16, %s722_s16, %s723_s17  }
  0x29   : > { %p27_p2 = scmp.eq.s32.totalorder %s26_s7, 0  ;;  %p36_p1 = scmp.ne.s32.totalorder %s715_s20, %s711_s19 }
  0x2a   : > { %p37_p4 = scmp.eq.s32.totalorder %s719_s21, 0  ;;  %p544_p6 = scmp.lt.s32.totalorder %s719_s21, 2 }
  0x2b   : > { %s846_s8 = scalar_select %p27_p2, %s715_s20, %s29_s6  }
  0x2c   : > { %p38_p8 = por %p37_p4, %p36_p1  ;;  %p984_p10 = scmp.eq.s32.totalorder %s780_s22, 1 }
  0x2d   : > { %s198_s10 = sand.u32 1, %s715_s20   ;;  %s497_s11 = sshll.u32 %s719_s21, 7 }
  0x2e   : > { %p850_p12 = por %p984_p10, %p36_p1  ;;  %s496_s12 = sshll.u32 %s198_s10, 3 }
  0x2f   : > { %s859_s14 = scalar_lea.hbm %s971_s0, %s497_s11  ;;  %s202_s28 = scalar_lea.vmem [#allocation2], %s496_s12 }
  0x30   : > { %s209_s6 = sshll.u32 %s202_s28, 4  ;;  %p861_p11 = pnand %p544_p6, %p38_p8  ;;  %s865_s6 = int_to_ptr.vmem [resolvable:$true] %s209_s6 }
  0x31   : > { %s199_s15 = scalar_lea.sflag [#allocation3], %s198_s10  ;;  %s619_s16 = scalar_lea.hbm %s859_s14, 128 }
  0x32   : > { %p620_p13 = scmp.ne.s32.totalorder %s859_s14, %s619_s16  ;;  %p621_p0 = pneg %p861_p11 }
  0x33   : > { %s624_s27 = scalar_lea.hbm %s971_s0, 256  ;;  %p625_p7 = scmp.lt.u32.totalorder %s859_s14, %s971_s0 }
  0x34   : > { %p622_p3 = pnand %p621_p0, %p620_p13  ;;  %p626_p9 = scmp.lt.u32.totalorder %s624_s27, %s619_s16 }
  0x35   : > { %p628_p1 = scmp.lt.u32.totalorder %s619_s16, %s859_s14 }
  0x36   : > { %p623_p5 = pneg %p622_p3  ;;  %p627_p2 = por %p626_p9, %p625_p7 }
  0x38   : > { %p629_p4 = por %p628_p1, %p627_p2 }
  0x3a   : > { %p630_p6 = pnand %p629_p4, %p623_p5 }
  0x3c   : > { %633 = shalt.err (!%p630_p6)
}
  0x3d   : > { %s634_s10 = scalar_lea.vmem %s865_s6, 128  ;;  %s724_s29 = smov [#allocation2]  }
  0x3e   : > { %p635_p8 = scmp.ne.s32.totalorder %s865_s6, %s634_s10  ;;  %s639_s13 = sshll.u32 %s724_s29, 4  ;;  %s640_s13 = int_to_ptr.vmem [resolvable:$false] %s639_s13 }
  0x3f   : > { %s641_s28 = scalar_lea.vmem %s640_s13, 256  ;;  %p642_p3 = scmp.lt.s32.totalorder %s865_s6, %s640_s13 }
  0x40   : > { %p637_p10 = pnand %p635_p8, %p621_p0  ;;  %p643_p7 = scmp.lt.s32.totalorder %s641_s28, %s634_s10 }
  0x42   : > { %p638_p13 = pneg %p637_p10  ;;  %p644_p9 = por %p643_p7, %p642_p3 }
  0x44   : > { %p645_p2 = pnand %p644_p9, %p638_p13 }
  0x46   : > { %648 = shalt.err (!%p645_p2)
}
  0x47   : > { %538 = dma.hbm_to_vmem [thread:$0]  (!%p861_p11), %s859_s14, 128, %s865_s6, %s199_s15  }
  0x48   : > { %p987_p5 = scmp.ne.s32.totalorder %s982_s26, 0 }
  0x49   : > { %s895_s16 = sand.u32 (!%p987_p5), 1, %s711_s19   ;;  %p988_p0 = scmp.ne.s32.totalorder (!%p987_p5), %s980_s24, 0 }
  0x4a   : > { %218 = sbr.rel (%p987_p5) target bundleno = 680 (0x2a8), region = 40  ;;  %s499_s17 = sshll.u32 (!%p987_p5), %s895_s16, 3 }
  0x4b   : > { %s221_s23 = scalar_lea.sflag (!%p987_p5), [#allocation3], %s895_s16  ;;  %s224_s27 = scalar_lea.vmem (!%p987_p5), [#allocation2], %s499_s17 }
  0x51   : > { %694 = dma.done.wait (%p988_p0), %s221_s23, 128  }
  0x52   : > { %696 = vsyncadd (%p988_p0), %s221_s23, 4294967168  ;;  %p989_p11 = scmp.eq.s32.totalorder %s780_s22, 0 }
  0x54   : > { %698 = dma.done.wait (%p989_p11), [#allocation6], 256   ;;  %p990_p1 = pmov %p989_p11 }
  0x55   : > { %v725_v0 = vmov 0.0|0.0   ;;  %vm726_vm0 = vmmov 0   ;;  %v727_v1 = vmov 0.0   ;;  %v256_v2 = vld [vmem:[#allocation5] sm:$0xff]  ;;  %v257_v3 = vld [vmem:[#allocation5 + $0x8] sm:$0xff]  ;;  %v255_v5 = vld [vmem:[%s224_s27] sm:$0xff] }
  0x56   : > { %700 = vsyncadd (%p990_p1), [#allocation6], 4294967040  ;;  %520 = vmatprep.subr.bf16.mxu0 %v725_v0  ;;  %517 = vmatprep.mubr.msk.f32.mxu0 %vm726_vm0, %v727_v1  ;;  %v521_v4 = vpack.c.bf16 %v257_v3, %v256_v2  ;;  %vm265_vm1 = vcmask 130048   ;;  %v502_v6 = vld [vmem:[%s973_s2] ss:$0 sm:$0xff]  ;;  %vm366_vm3 = vcmask 261120  }
  0x57   : > { %v504_v45 = vld [vmem:[%s974_s3] ss:$0 sm:$0xff]  ;;  %s507_s11 = sshll.u32 %s780_s22, 7  ;;  %s254_s12 = scalar_lea.vmem [#allocation7], %s499_s17 }
  0x58   : > { %522 = vmatpush3.bf16.msra.mxu0 %v521_v4  ;;  %v505_v47 = vld [vmem:[%s975_s4] ss:$0 sm:$0xff]  ;;  %s412_s10 = sshll.u32 %s254_s12, 4  ;;  %s926_s28 = scalar_lea.hbm %s976_s5, %s507_s11  ;;  %s928_s10 = int_to_ptr.vmem [resolvable:$true] %s412_s10 }
  0x59   : > { %s399_s23 = scalar_lea.sflag [#allocation4], %s895_s16  ;;  %s649_s27 = scalar_lea.vmem %s928_s10, 128 }
  0x5a   : > { %p650_p4 = scmp.ne.s32.totalorder %s928_s10, %s649_s27  ;;  %s728_s22 = smov [#allocation7]  }
  0x5b   : > { %518 = vmatmul.mubr.msk.f32.vlgmr.msra.gmra.mrb[0].mxu0 %vm265_vm1, %v255_v5  ;;  %s653_s17 = sshll.u32 %s728_s22, 4  ;;  %s654_s17 = int_to_ptr.vmem [resolvable:$false] %s653_s17 }
  0x5c   : > { %p651_p6 = pnand %p650_p4, %p850_p12  ;;  %s655_s24 = scalar_lea.vmem %s654_s17, 256 }
  0x5d   : > { %p656_p10 = scmp.lt.s32.totalorder %s928_s10, %s654_s17  ;;  %p657_p13 = scmp.lt.s32.totalorder %s655_s24, %s649_s27 }
  0x5e   : > { %p652_p8 = pneg %p651_p6 }
  0x5f   : > { %p658_p3 = por %p657_p13, %p656_p10 }
  0x61   : > { %p659_p7 = pnand %p658_p3, %p652_p8 }
 0x12e   : > { %v335_v7 = vpop.f32.mrb[0].mxu0 }
 0x12f   : > { %v336_v8 = vadd.f32 %v502_v6, %v335_v7  ;;  %v519_v9 = vpop.f32.mrb[1].mxu0 }
 0x131   : > { %v340_v10 = vmul.f32 0.70710677, %v336_v8  ;;  %v339_v32 = vmul.f32 0.5, %v336_v8 }
 0x133   : > { %v341_v11 = vand.u32 2147483647, %v340_v10  ;;  %vm361_vm2 = vcmp.lt.f32.partialorder %v340_v10, 0.0 }
 0x135   : > { %v342_v12 = vmul.f32 0.3275911, %v341_v11  ;;  %v355_v14 = vsub.f32 0.0, %v341_v11 }
 0x137   : > { %v343_v13 = vadd.f32 1.0, %v342_v12  ;;  %v356_v16 = vmul.f32 %v355_v14, %v341_v11 }
 0x139   : > { %585 = vrcp.f32 %v343_v13  ;;  %v357_v19 = vmul.f32 1.442695, %v356_v16 }
 0x13b   : > { %587 = vpow2.f32 %v357_v19 }
 0x143   : > { %v586_v15 = vpop.eup %585 }
 0x144   : > { %v346_v17 = vmul.f32 1.0614054, %v586_v15 }
 0x145   : > { %v588_v27 = vpop.eup %587 }
 0x146   : > { %v347_v18 = vadd.f32 -1.4531521, %v346_v17 }
 0x148   : > { %v348_v20 = vmul.f32 %v586_v15, %v347_v18 }
 0x14a   : > { %v349_v21 = vadd.f32 1.4214138, %v348_v20 }
 0x14c   : > { %v350_v22 = vmul.f32 %v586_v15, %v349_v21 }
 0x14e   : > { %v351_v23 = vadd.f32 -0.28449672, %v350_v22 }
 0x150   : > { %v352_v24 = vmul.f32 %v586_v15, %v351_v23 }
 0x152   : > { %v353_v25 = vadd.f32 0.2548296, %v352_v24 }
 0x154   : > { %v354_v26 = vmul.f32 %v586_v15, %v353_v25 }
 0x156   : > { %v359_v28 = vmul.f32 %v588_v27, %v354_v26 }
 0x158   : > { %v360_v29 = vsub.f32 1.0, %v359_v28 }
 0x15a   : > { %v362_v30 = vsub.f32 0.0, %v360_v29 }
 0x15c   : > { %v363_v31 = vsel %vm361_vm2, %v362_v30, %v360_v29 }
 0x15d   : > { %v364_v33 = vadd.f32 1.0, %v363_v31 }
 0x15f   : > { %v365_v34 = vmul.f32 %v364_v33, %v339_v32 }
 0x161   : > { %v367_v35 = vsel %vm366_vm3, %v365_v34, 0.0 }
 0x162   : > { %368 = vadd.xlane.f32.xlu0 %v367_v35 }
 0x1ef   : > { %v369_v36 = vpop.xlane.xlu0 %368 }
 0x1f0   : > { %v371_v37 = vmul.f32 0.03125, %v369_v36 }
 0x1f2   : > { %v372_v38 = vsub.f32 %v365_v34, %v371_v37 }
 0x1f4   : > { %v373_v39 = vmul.f32 %v372_v38, %v372_v38 }
 0x1f6   : > { %v374_v40 = vsel %vm366_vm3, %v373_v39, 0.0 }
 0x1f7   : > { %375 = vadd.xlane.f32.xlu0 %v374_v40 }
 0x284   : > { %v376_v41 = vpop.xlane.xlu0 %375 }
 0x285   : > { %v377_v42 = vmul.f32 0.03125, %v376_v41 }
 0x287   : > { %v378_v43 = vadd.f32 1e-12, %v377_v42 }
 0x289   : > { %589 = vrsqrt.f32 %v378_v43 }
 0x293   : > { %v590_v44 = vpop.eup %589 }
 0x294   : > { %v380_v46 = vmul.f32 %v590_v44, %v372_v38 }
 0x296   : > { %v389_v48 = vmul.f32 %v504_v45, %v380_v46 }
 0x298   : > { %v396_v49 = vadd.f32 %v505_v47, %v389_v48 }
 0x29a   : > { %397 = vst.msk [vmem:[%s254_s12] sm:$0xff] %vm366_vm3, %v396_v49 }
 0x29b   : > { %662 = shalt.err (!%p659_p7)
}
 0x29c   : > { %s663_s16 = scalar_lea.hbm %s926_s28, 128  ;;  %s667_s6 = scalar_lea.hbm %s976_s5, 256 }
 0x29d   : > { %p664_p9 = scmp.ne.s32.totalorder %s926_s28, %s663_s16  ;;  %p668_p0 = scmp.lt.u32.totalorder %s926_s28, %s976_s5 }
 0x29e   : > { %p669_p11 = scmp.lt.u32.totalorder %s667_s6, %s663_s16  ;;  %p671_p4 = scmp.lt.u32.totalorder %s663_s16, %s926_s28 }
 0x29f   : > { %p665_p2 = pnand %p664_p9, %p850_p12 }
 0x2a0   : > { %p670_p1 = por %p669_p11, %p668_p0 }
 0x2a1   : > { %p666_p5 = pneg %p665_p2 }
 0x2a2   : > { %p672_p6 = por %p671_p4, %p670_p1 }
 0x2a4   : > { %p673_p8 = pnand %p672_p6, %p666_p5 }
 0x2a6   : > { %676 = shalt.err (!%p673_p8)
}
 0x2a7   : > { %529 = dma.vmem_to_hbm [thread:$0]  (%p850_p12), %s928_s10, 128, %s926_s28, %s399_s23  }
 0x2a8 PF: > { %s424_s11 = sand.u32 1, %s707_s18   ;;  %p991_p10 = scmp.ne.s32.totalorder %s981_s25, 0 }
 0x2a9   : > { %p992_p13 = scmp.ge.s32.totalorder %s719_s21, 2  ;;  %s425_s12 = scalar_lea.sflag [#allocation4], %s424_s11 }
 0x2ab   : > { %p540_p3 = pnand %p992_p13, %p991_p10 }
 0x2ad   : > { %702 = dma.done.wait (!%p540_p3), %s425_s12, 128  }
 0x2ae   : > { %704 = vsyncadd (!%p540_p3), %s425_s12, 4294967168  ;;  %p19_p7 = scmp.ge.s32.totalorder %s815_s30, 4   ;;  %s993_s18 = smov %s711_s19 }
 0x2af   : > { %s994_s19 = smov %s715_s20  ;;  %s995_s20 = smov %s846_s8 }
 0x2b0   : > { %s996_s21 = smov %s815_s30  ;;  %21 = sbr.rel (!%p19_p7) target bundleno = 6 (0x6), region = 89 }
 0x2b7   :  { %430 = vsyncpa [#allocation3], 1 }
 0x2b8   :  { %432 = vsyncpa [#allocation3 + $0x1], 1 }
 0x2b9   :  { %433 = vsyncpa [#allocation6], 1 }
 0x2ba   :  { %434 = vsyncpa [#allocation4], 1 }
 0x2bb   :  { %436 = vsyncpa [#allocation4 + $0x1], 1 }

</bundles_post_ra>
